<compile_context>
chip_gen: v6e
topology: v6e:2x2x1
jax: 0.10.0
libtpu: 0.0.40
codegen_flags: <defaults>
</compile_context>

<pallas_src>
import jax
import jax.numpy as jnp
from jax.experimental import pallas as pl
from jax.experimental.pallas import tpu as pltpu


def _head_kernel(x_ref, w1_ref, b1_ref, w2_ref, b2_ref, o_ref):
    """Fused MLP head: relu(x @ W1 + b1) @ W2 + b2 (dropout == identity in eval).

    Matmul operands arrive in bf16; accumulation and the bias/ReLU epilogue are
    f32 (preferred_element_type), then the hidden activation is re-cast to the
    weight dtype for the second MXU pass.
    """
    x = x_ref[...]                                       # (tm, D) bf16
    h = jnp.dot(x, w1_ref[...],
                preferred_element_type=jnp.float32)      # (tm, H) f32 acc (MXU)
    h = h + b1_ref[...]                                  # f32 bias broadcast
    h = jnp.maximum(h, 0.0)                              # f32 ReLU (VPU)
    h = h.astype(w2_ref.dtype)                           # bf16 for second MXU pass
    o = jnp.dot(h, w2_ref[...],
                preferred_element_type=jnp.float32)      # (tm, Lp) f32 acc
    o = o + b2_ref[...]                                  # f32 bias broadcast
    o_ref[...] = o.astype(o_ref.dtype)


def classification_head(x, w1, b1, w2, b2, *, tm=None,
                        compute_dtype=jnp.bfloat16):
    """x: (B, D) pooled audio embedding.  Returns logits (B, L) in x.dtype."""
    B, D = x.shape
    H = w1.shape[1]
    L = w2.shape[1]

    # --- Lane-dense output: pad label dim up to a multiple of 128. ----------
    Lp = max(128, pl.cdiv(L, 128) * 128)

    # --- Batch tile: full-height MXU tiles, batch padded to a tile multiple. -
    if tm is None:
        tm = min(512, pl.cdiv(B, 8) * 8)
    Bp = pl.cdiv(B, tm) * tm

    x_p = x if Bp == B else jnp.pad(x, ((0, Bp - B), (0, 0)))
    w2_p = w2 if Lp == L else jnp.pad(w2, ((0, 0), (0, Lp - L)))
    b2_p = b2 if Lp == L else jnp.pad(b2, ((0, 0), (0, Lp - L)))

    # --- bf16 streaming for matmul operands; biases stay f32. ---------------
    x_c = x_p.astype(compute_dtype)
    w1_c = w1.astype(compute_dtype)
    w2_c = w2_p.astype(compute_dtype)
    b1_f = b1.astype(jnp.float32)
    b2_f = b2_p.astype(jnp.float32)

    grid = (Bp // tm,)

    itemsize = jnp.dtype(compute_dtype).itemsize
    cost = pl.CostEstimate(
        flops=2 * Bp * D * H + 2 * Bp * H * Lp,
        transcendentals=0,
        bytes_accessed=(Bp * D * itemsize          # x
                        + D * H * itemsize         # W1
                        + H * Lp * itemsize        # W2
                        + (H + Lp) * 4             # biases
                        + Bp * Lp * 4),            # output
    )

    out = pl.pallas_call(
        _head_kernel,
        out_shape=jax.ShapeDtypeStruct((Bp, Lp), jnp.float32),
        grid_spec=pltpu.PrefetchScalarGridSpec(
            num_scalar_prefetch=0,
            grid=grid,
            in_specs=[
                pl.BlockSpec((tm, D), lambda i: (i, 0)),   # x tile (pipelined)
                pl.BlockSpec((D, H), lambda i: (0, 0)),    # W1 (VMEM resident)
                pl.BlockSpec((1, H), lambda i: (0, 0)),    # b1
                pl.BlockSpec((H, Lp), lambda i: (0, 0)),   # W2 (VMEM resident)
                pl.BlockSpec((1, Lp), lambda i: (0, 0)),   # b2
            ],
            out_specs=pl.BlockSpec((tm, Lp), lambda i: (i, 0)),
        ),
        compiler_params=pltpu.CompilerParams(
            dimension_semantics=("parallel",),
        ),
        cost_estimate=cost,
    )(x_c, w1_c, b1_f, w2_c, b2_f)

    # Strip batch and label padding; return in the input dtype.
    return out[:B, :L].astype(x.dtype)


def init_params(key, audio_embed_dim, hidden, label_number):
    """Deterministic synthetic parameters matching nn.Linear shapes."""
    k1, k2, k3, k4 = jax.random.split(key, 4)
    # torch Linear(in, out): weight (out, in), bias (out).  We store W transposed
    # as (in, out) for the x @ W kernel layout.
    scale1 = 1.0 / jnp.sqrt(audio_embed_dim)
    scale2 = 1.0 / jnp.sqrt(hidden)
    w1 = jax.random.uniform(k1, (audio_embed_dim, hidden), jnp.float32,
                            -scale1, scale1)
    b1 = jax.random.uniform(k2, (1, hidden), jnp.float32, -scale1, scale1)
    w2 = jax.random.uniform(k3, (hidden, label_number), jnp.float32,
                            -scale2, scale2)
    b2 = jax.random.uniform(k4, (1, label_number), jnp.float32, -scale2, scale2)
    return w1, b1, w2, b2


if __name__ == "__main__":
    # Small shapes consistent with the module:
    #   B = 6 audio clips (deliberately NOT a multiple of 8 to exercise the
    #   cdiv+pad path), D = 512 (CLAP projection_dim), hidden = 256, labels = 8.
    B, D, H, L = 6, 512, 256, 8

    key = jax.random.PRNGKey(0)
    kx, kp = jax.random.split(key)

    # Synthetic stand-in for the CLAP pooled audio embedding.
    x = jax.random.normal(kx, (B, D), jnp.float32)
    w1, b1, w2, b2 = init_params(kp, D, H, L)

    head = jax.jit(classification_head)   # fuse pad/cast prep with the call
    logits = head(x, w1, b1, w2, b2)
    logits = jax.block_until_ready(logits)

    # Cross-check against a plain-JAX f32 reference of the same head.
    # bf16 operand streaming (with f32 accumulation) gives ~1e-2-level error,
    # so the tolerance is loosened accordingly.
    ref = jnp.maximum(x @ w1 + b1, 0.0) @ w2 + b2
    assert logits.shape == (B, L)
    assert jnp.allclose(logits, ref, atol=5e-2, rtol=5e-2), (
        float(jnp.max(jnp.abs(logits - ref))))

    print("KERNEL_OK")
</pallas_src>

<mosaic_0001>
module attributes {stable_mosaic.version = 11 : i64} {
  func.func @_head_kernel(%arg0: i32, %arg1: memref<8x512xbf16, #tpu.memory_space<vmem>>, %arg2: memref<512x256xbf16, #tpu.memory_space<vmem>>, %arg3: memref<1x256xf32, #tpu.memory_space<vmem>>, %arg4: memref<256x128xbf16, #tpu.memory_space<vmem>>, %arg5: memref<1x128xf32, #tpu.memory_space<vmem>>, %arg6: memref<8x128xf32, #tpu.memory_space<vmem>>) attributes {dimension_semantics = [#tpu.dimension_semantics<parallel>], iteration_bounds = array<i64: 1>, scalar_prefetch = 0 : i64, scratch_operands = 0 : i64, tpu.core_type = #tpu.core_type<tc>, window_params = [{transform_indices = @transform_0, window_bounds = array<i64: 8, 512>}, {pipeline_mode = #tpu.pipeline_mode<synchronous>, transform_indices = @transform_1, window_bounds = array<i64: 512, 256>}, {pipeline_mode = #tpu.pipeline_mode<synchronous>, transform_indices = @transform_2, window_bounds = array<i64: 1, 256>}, {pipeline_mode = #tpu.pipeline_mode<synchronous>, transform_indices = @transform_3, window_bounds = array<i64: 256, 128>}, {pipeline_mode = #tpu.pipeline_mode<synchronous>, transform_indices = @transform_4, window_bounds = array<i64: 1, 128>}, {transform_indices = @transform_5, window_bounds = array<i64: 8, 128>}]} {
    %c0 = arith.constant 0 : index
    %c0_0 = arith.constant 0 : index
    %0 = vector.load %arg1[%c0, %c0_0] : memref<8x512xbf16, #tpu.memory_space<vmem>>, vector<8x512xbf16>
    %c0_1 = arith.constant 0 : index
    %c0_2 = arith.constant 0 : index
    %1 = vector.load %arg2[%c0_1, %c0_2] : memref<512x256xbf16, #tpu.memory_space<vmem>>, vector<512x256xbf16>
    %cst = arith.constant dense<0.000000e+00> : vector<8x256xf32>
    %2 = tpu.matmul %0, %1, %cst {dimension_numbers = #tpu.dot_dimension_numbers<[1], [0], [0], [1], [0, 0, 1, 1], [], []>} : vector<8x512xbf16>, vector<512x256xbf16>, vector<8x256xf32> -> vector<8x256xf32>
    %c0_3 = arith.constant 0 : index
    %c0_4 = arith.constant 0 : index
    %3 = vector.load %arg3[%c0_3, %c0_4] : memref<1x256xf32, #tpu.memory_space<vmem>>, vector<1x256xf32>
    %4 = vector.broadcast %3 : vector<1x256xf32> to vector<8x256xf32>
    %5 = arith.addf %2, %4 : vector<8x256xf32>
    %cst_5 = arith.constant 0.000000e+00 : f32
    %6 = vector.broadcast %cst_5 : f32 to vector<8x256xf32>
    %7 = arith.maximumf %5, %6 : vector<8x256xf32>
    %8 = arith.truncf %7 : vector<8x256xf32> to vector<8x256xbf16>
    %c0_6 = arith.constant 0 : index
    %c0_7 = arith.constant 0 : index
    %9 = vector.load %arg4[%c0_6, %c0_7] : memref<256x128xbf16, #tpu.memory_space<vmem>>, vector<256x128xbf16>
    %cst_8 = arith.constant dense<0.000000e+00> : vector<8x128xf32>
    %10 = tpu.matmul %8, %9, %cst_8 {dimension_numbers = #tpu.dot_dimension_numbers<[1], [0], [0], [1], [0, 0, 1, 1], [], []>} : vector<8x256xbf16>, vector<256x128xbf16>, vector<8x128xf32> -> vector<8x128xf32>
    %c0_9 = arith.constant 0 : index
    %c0_10 = arith.constant 0 : index
    %11 = vector.load %arg5[%c0_9, %c0_10] : memref<1x128xf32, #tpu.memory_space<vmem>>, vector<1x128xf32>
    %12 = vector.broadcast %11 : vector<1x128xf32> to vector<8x128xf32>
    %13 = arith.addf %10, %12 : vector<8x128xf32>
    %c0_11 = arith.constant 0 : index
    %c0_12 = arith.constant 0 : index
    %14 = vector.load %arg6[%c0_11, %c0_12] : memref<8x128xf32, #tpu.memory_space<vmem>>, vector<8x128xf32>
    tpu.vector_store %arg6[%c0_11, %c0_12], %13 {strides = array<i32>} : memref<8x128xf32, #tpu.memory_space<vmem>>, vector<8x128xf32>,
    return
  }
  func.func @transform_0(%arg0: i32) -> (i32, i32) {
    %c0_i32 = arith.constant 0 : i32
    %c0_i32_0 = arith.constant 0 : i32
    return %arg0, %c0_i32 : i32, i32
  }
  func.func @transform_1(%arg0: i32) -> (i32, i32) {
    %c0_i32 = arith.constant 0 : i32
    %c0_i32_0 = arith.constant 0 : i32
    %c0_i32_1 = arith.constant 0 : i32
    return %c0_i32, %c0_i32_0 : i32, i32
  }
  func.func @transform_2(%arg0: i32) -> (i32, i32) {
    %c0_i32 = arith.constant 0 : i32
    %c0_i32_0 = arith.constant 0 : i32
    %c0_i32_1 = arith.constant 0 : i32
    return %c0_i32, %c0_i32_0 : i32, i32
  }
  func.func @transform_3(%arg0: i32) -> (i32, i32) {
    %c0_i32 = arith.constant 0 : i32
    %c0_i32_0 = arith.constant 0 : i32
    %c0_i32_1 = arith.constant 0 : i32
    return %c0_i32, %c0_i32_0 : i32, i32
  }
  func.func @transform_4(%arg0: i32) -> (i32, i32) {
    %c0_i32 = arith.constant 0 : i32
    %c0_i32_0 = arith.constant 0 : i32
    %c0_i32_1 = arith.constant 0 : i32
    return %c0_i32, %c0_i32_0 : i32, i32
  }
  func.func @transform_5(%arg0: i32) -> (i32, i32) {
    %c0_i32 = arith.constant 0 : i32
    %c0_i32_0 = arith.constant 0 : i32
    return %arg0, %c0_i32 : i32, i32
  }
}

</mosaic_0001>

<bundles_post_ra>
// kernel: classification_head.1
= control target key start
LH: loop header
LB: loop body
LE: loop exit
PB: predicated region body
PF: predicated region fallthrough
CT: control target
= control target key end

     0   :  { %s1242_s0 = inlined_call_operand.vmem [shape: bf16[8,512], index: 0, kind: input, shape index: {}]   ;;  %s1243_s1 = inlined_call_operand.vmem [shape: bf16[512,256], index: 1, kind: input, shape index: {}]   ;;  %s1244_s2 = inlined_call_operand.vmem [shape: f32[1,256], index: 2, kind: input, shape index: {}]   ;;  %s1245_s3 = inlined_call_operand.vmem [shape: bf16[256,128], index: 3, kind: input, shape index: {}]   ;;  %s1246_s4 = inlined_call_operand.vmem [shape: f32[1,128], index: 4, kind: input, shape index: {}]   ;;  %s1247_s5 = inlined_call_operand.hbm [shape: f32[8,128], index: 5, kind: output, shape index: {}]  }
   0x1   :  { %v818_v0 = vld [vmem:[%s1243_s1 + $0x74] ss:$8 sps:$4 sm:$0xff]   ;;  %v822_v2 = vld [vmem:[%s1243_s1 + $0x70] ss:$8 sps:$4 sm:$0xff]   ;;  %v824_v4 = vld [vmem:[%s1243_s1 + $0x64] ss:$8 sps:$4 sm:$0xff]  }
   0x2   :  { %v820_v1 = vld [vmem:[%s1243_s1 + $0x174] ss:$8 sps:$4 sm:$0xff]   ;;  %434 = vmatprep.subr.bf16.mxu0 %v818_v0  ;;  %v823_v3 = vld [vmem:[%s1243_s1 + $0x170] ss:$8 sps:$4 sm:$0xff]   ;;  %v826_v5 = vld [vmem:[%s1243_s1 + $0x164] ss:$8 sps:$4 sm:$0xff]  }
   0x3   :  { %475 = vmatprep.subr.bf16.mxu1 %v820_v1  ;;  %435 = vmatpush1.bf16.msra.mxu0 %v822_v2  ;;  %v828_v6 = vld [vmem:[%s1243_s1 + $0x60] ss:$8 sps:$4 sm:$0xff]   ;;  %v830_v8 = vld [vmem:[%s1243_s1 + $0x54] ss:$8 sps:$4 sm:$0xff]   ;;  %v834_v10 = vld [vmem:[%s1243_s1 + $0x50] ss:$8 sps:$4 sm:$0xff]  }
   0x4   :  { %476 = vmatpush1.bf16.msra.mxu1 %v823_v3  ;;  %436 = vmatprep.subr.bf16.mxu0 %v824_v4  ;;  %v829_v7 = vld [vmem:[%s1243_s1 + $0x160] ss:$8 sps:$4 sm:$0xff]   ;;  %v832_v9 = vld [vmem:[%s1243_s1 + $0x154] ss:$8 sps:$4 sm:$0xff]   ;;  %v835_v11 = vld [vmem:[%s1243_s1 + $0x150] ss:$8 sps:$4 sm:$0xff]  }
   0x5   :  { %477 = vmatprep.subr.bf16.mxu1 %v826_v5  ;;  %v836_v12 = vld [vmem:[%s1243_s1 + $0x44] ss:$8 sps:$4 sm:$0xff]   ;;  %v840_v14 = vld [vmem:[%s1243_s1 + $0x40] ss:$8 sps:$4 sm:$0xff]   ;;  %v842_v16 = vld [vmem:[%s1243_s1 + $0x34] ss:$8 sps:$4 sm:$0xff]  }
   0x6   :  { %v838_v13 = vld [vmem:[%s1243_s1 + $0x144] ss:$8 sps:$4 sm:$0xff]   ;;  %v841_v15 = vld [vmem:[%s1243_s1 + $0x140] ss:$8 sps:$4 sm:$0xff]   ;;  %v844_v17 = vld [vmem:[%s1243_s1 + $0x134] ss:$8 sps:$4 sm:$0xff]  }
   0x7   :  { %437 = vmatpush1.bf16.msra.mxu0 %v828_v6  ;;  %v846_v18 = vld [vmem:[%s1243_s1 + $0x30] ss:$8 sps:$4 sm:$0xff]   ;;  %v848_v20 = vld [vmem:[%s1243_s1 + $0x24] ss:$8 sps:$4 sm:$0xff]   ;;  %v852_v22 = vld [vmem:[%s1243_s1 + $0x20] ss:$8 sps:$4 sm:$0xff]  }
   0x8   :  { %478 = vmatpush1.bf16.msra.mxu1 %v829_v7  ;;  %438 = vmatprep.subr.bf16.mxu0 %v830_v8  ;;  %v847_v19 = vld [vmem:[%s1243_s1 + $0x130] ss:$8 sps:$4 sm:$0xff]   ;;  %v850_v21 = vld [vmem:[%s1243_s1 + $0x124] ss:$8 sps:$4 sm:$0xff]   ;;  %v853_v23 = vld [vmem:[%s1243_s1 + $0x120] ss:$8 sps:$4 sm:$0xff]  }
   0x9   :  { %479 = vmatprep.subr.bf16.mxu1 %v832_v9  ;;  %v854_v24 = vld [vmem:[%s1243_s1 + $0x14] ss:$8 sps:$4 sm:$0xff]   ;;  %v858_v26 = vld [vmem:[%s1243_s1 + $0x10] ss:$8 sps:$4 sm:$0xff]   ;;  %v860_v28 = vld [vmem:[%s1243_s1 + $0x4] ss:$8 sps:$4 sm:$0xff]  }
   0xa   :  { %v856_v25 = vld [vmem:[%s1243_s1 + $0x114] ss:$8 sps:$4 sm:$0xff]   ;;  %v859_v27 = vld [vmem:[%s1243_s1 + $0x110] ss:$8 sps:$4 sm:$0xff]   ;;  %v862_v29 = vld [vmem:[%s1243_s1 + $0x104] ss:$8 sps:$4 sm:$0xff]  }
   0xb   :  { %439 = vmatpush1.bf16.msra.mxu0 %v834_v10  ;;  %v864_v30 = vld [vmem:[%s1243_s1] ss:$8 sps:$4 sm:$0xff]   ;;  %v866_v32 = vld [vmem:[%s1243_s1 + $0xf4] ss:$8 sps:$4 sm:$0xff]   ;;  %v870_v34 = vld [vmem:[%s1243_s1 + $0xf0] ss:$8 sps:$4 sm:$0xff]  }
   0xc   :  { %480 = vmatpush1.bf16.msra.mxu1 %v835_v11  ;;  %440 = vmatprep.subr.bf16.mxu0 %v836_v12  ;;  %v865_v31 = vld [vmem:[%s1243_s1 + $0x100] ss:$8 sps:$4 sm:$0xff]   ;;  %v868_v33 = vld [vmem:[%s1243_s1 + $0x1f4] ss:$8 sps:$4 sm:$0xff]   ;;  %v871_v35 = vld [vmem:[%s1243_s1 + $0x1f0] ss:$8 sps:$4 sm:$0xff]  }
   0xd   :  { %481 = vmatprep.subr.bf16.mxu1 %v838_v13  ;;  %v872_v36 = vld [vmem:[%s1243_s1 + $0xe4] ss:$8 sps:$4 sm:$0xff]   ;;  %v876_v38 = vld [vmem:[%s1243_s1 + $0xe0] ss:$8 sps:$4 sm:$0xff]   ;;  %v878_v40 = vld [vmem:[%s1243_s1 + $0xd4] ss:$8 sps:$4 sm:$0xff]  }
   0xe   :  { %v874_v37 = vld [vmem:[%s1243_s1 + $0x1e4] ss:$8 sps:$4 sm:$0xff]   ;;  %v877_v39 = vld [vmem:[%s1243_s1 + $0x1e0] ss:$8 sps:$4 sm:$0xff]   ;;  %v880_v41 = vld [vmem:[%s1243_s1 + $0x1d4] ss:$8 sps:$4 sm:$0xff]  }
   0xf   :  { %441 = vmatpush1.bf16.msra.mxu0 %v840_v14  ;;  %v882_v42 = vld [vmem:[%s1243_s1 + $0xd0] ss:$8 sps:$4 sm:$0xff]   ;;  %v884_v44 = vld [vmem:[%s1243_s1 + $0xc4] ss:$8 sps:$4 sm:$0xff]   ;;  %v888_v46 = vld [vmem:[%s1243_s1 + $0xc0] ss:$8 sps:$4 sm:$0xff]  }
  0x10   :  { %482 = vmatpush1.bf16.msra.mxu1 %v841_v15  ;;  %442 = vmatprep.subr.bf16.mxu0 %v842_v16  ;;  %v883_v43 = vld [vmem:[%s1243_s1 + $0x1d0] ss:$8 sps:$4 sm:$0xff]   ;;  %v886_v45 = vld [vmem:[%s1243_s1 + $0x1c4] ss:$8 sps:$4 sm:$0xff]   ;;  %v889_v47 = vld [vmem:[%s1243_s1 + $0x1c0] ss:$8 sps:$4 sm:$0xff]  }
  0x11   :  { %483 = vmatprep.subr.bf16.mxu1 %v844_v17  ;;  %v22_v48 = vld [vmem:[%s1242_s0] sm:$0xff]  ;;  %v23_v50 = vld [vmem:[%s1242_s0 + $0x8] sm:$0xff]  ;;  %v890_v51 = vld [vmem:[%s1243_s1 + $0xb4] ss:$8 sps:$4 sm:$0xff]  }
  0x12   :  { %v711_v49 = vcombine.high %v22_v48, %v22_v48  ;;  %v713_v52 = vcombine.high %v23_v50, %v23_v50  ;;  %v892_v53 = vld [vmem:[%s1243_s1 + $0x1b4] ss:$8 sps:$4 sm:$0xff]   ;;  %v894_v54 = vld [vmem:[%s1243_s1 + $0xb0] ss:$8 sps:$4 sm:$0xff]   ;;  %v896_v56 = vld [vmem:[%s1243_s1 + $0xa4] ss:$8 sps:$4 sm:$0xff]  }
  0x13   :  { %443 = vmatpush1.bf16.msra.mxu0 %v846_v18  ;;  %v895_v55 = vld [vmem:[%s1243_s1 + $0x1b0] ss:$8 sps:$4 sm:$0xff]   ;;  %v898_v57 = vld [vmem:[%s1243_s1 + $0x1a4] ss:$8 sps:$4 sm:$0xff]   ;;  %v900_v58 = vld [vmem:[%s1243_s1 + $0xa0] ss:$8 sps:$4 sm:$0xff]  }
  0x14   :  { %484 = vmatpush1.bf16.msra.mxu1 %v847_v19  ;;  %444 = vmatprep.subr.bf16.mxu0 %v848_v20  ;;  %v901_v59 = vld [vmem:[%s1243_s1 + $0x1a0] ss:$8 sps:$4 sm:$0xff]   ;;  %v902_v60 = vld [vmem:[%s1243_s1 + $0x94] ss:$8 sps:$4 sm:$0xff]   ;;  %v906_v62 = vld [vmem:[%s1243_s1 + $0x90] ss:$8 sps:$4 sm:$0xff]  }
  0x15   :  { %485 = vmatprep.subr.bf16.mxu1 %v850_v21  ;;  %466 = vmatprep.mubr.bf16.mxu0 %v711_v49  ;;  %v904_v61 = vld [vmem:[%s1243_s1 + $0x194] ss:$8 sps:$4 sm:$0xff]   ;;  %v907_v63 = vld [vmem:[%s1243_s1 + $0x190] ss:$8 sps:$4 sm:$0xff]   ;;  %v908_v0 = vld [vmem:[%s1243_s1 + $0x84] ss:$8 sps:$4 sm:$0xff]  }
  0x16   :  { %507 = vmatprep.mubr.bf16.mxu1 %v713_v52  ;;  %v910_v1 = vld [vmem:[%s1243_s1 + $0x184] ss:$8 sps:$4 sm:$0xff]  }
  0x17   :  { %445 = vmatpush1.bf16.msra.mxu0 %v852_v22 }
  0x18   :  { %486 = vmatpush1.bf16.msra.mxu1 %v853_v23  ;;  %446 = vmatprep.subr.bf16.mxu0 %v854_v24 }
  0x19   :  { %487 = vmatprep.subr.bf16.mxu1 %v856_v25 }
  0x1b   :  { %447 = vmatpush1.bf16.msra.mxu0 %v858_v26 }
  0x1c   :  { %488 = vmatpush1.bf16.msra.mxu1 %v859_v27  ;;  %448 = vmatprep.subr.bf16.mxu0 %v860_v28 }
  0x1d   :  { %489 = vmatprep.subr.bf16.mxu1 %v862_v29 }
  0x1f   :  { %449 = vmatpush1.bf16.msra.mxu0 %v864_v30 }
  0x20   :  { %490 = vmatpush1.bf16.msra.mxu1 %v865_v31  ;;  %450 = vmatprep.subr.bf16.mxu0 %v866_v32 }
  0x21   :  { %491 = vmatprep.subr.bf16.mxu1 %v868_v33 }
  0x23   :  { %451 = vmatpush2.bf16.msra.mxu0 %v870_v34 }
  0x24   :  { %492 = vmatpush2.bf16.msra.mxu1 %v871_v35  ;;  %452 = vmatprep.subr.bf16.mxu0 %v872_v36 }
  0x25   :  { %493 = vmatprep.subr.bf16.mxu1 %v874_v37 }
  0x27   :  { %453 = vmatpush2.bf16.msra.mxu0 %v876_v38 }
  0x28   :  { %494 = vmatpush2.bf16.msra.mxu1 %v877_v39  ;;  %454 = vmatprep.subr.bf16.mxu0 %v878_v40 }
  0x29   :  { %495 = vmatprep.subr.bf16.mxu1 %v880_v41 }
  0x2b   :  { %455 = vmatpush2.bf16.msra.mxu0 %v882_v42 }
  0x2c   :  { %496 = vmatpush2.bf16.msra.mxu1 %v883_v43  ;;  %456 = vmatprep.subr.bf16.mxu0 %v884_v44 }
  0x2d   :  { %497 = vmatprep.subr.bf16.mxu1 %v886_v45 }
  0x2f   :  { %457 = vmatpush2.bf16.msra.mxu0 %v888_v46 }
  0x30   :  { %498 = vmatpush2.bf16.msra.mxu1 %v889_v47  ;;  %458 = vmatprep.subr.bf16.mxu0 %v890_v51 }
  0x31   :  { %499 = vmatprep.subr.bf16.mxu1 %v892_v53 }
  0x33   :  { %459 = vmatpush2.bf16.msra.mxu0 %v894_v54 }
  0x34   :  { %500 = vmatpush2.bf16.msra.mxu1 %v895_v55  ;;  %460 = vmatprep.subr.bf16.mxu0 %v896_v56 }
  0x35   :  { %501 = vmatprep.subr.bf16.mxu1 %v898_v57 }
  0x37   :  { %461 = vmatpush2.bf16.msra.mxu0 %v900_v58 }
  0x38   :  { %502 = vmatpush2.bf16.msra.mxu1 %v901_v59  ;;  %462 = vmatprep.subr.bf16.mxu0 %v902_v60 }
  0x39   :  { %503 = vmatprep.subr.bf16.mxu1 %v904_v61 }
  0x3a   :  { %10 = vsyncpa [#allocation3], 0  ;;  %v912_v2 = vld [vmem:[%s1243_s1 + $0x80] ss:$8 sps:$4 sm:$0xff]   ;;  %v918_v4 = vld [vmem:[%s1245_s3 + $0x78] sm:$0xff]   ;;  %v710_v5 = vcombine.low %v22_v48, %v22_v48  ;;  %v712_v6 = vcombine.low %v23_v50, %v23_v50  ;;  %v90_v22 = vlaneseq  ;;  %s956_s29 = smov [#allocation2]  }
  0x3b   :  { %463 = vmatpush2.bf16.msra.mxu0 %v906_v62  ;;  %v913_v3 = vld [vmem:[%s1243_s1 + $0x180] ss:$8 sps:$4 sm:$0xff]   ;;  %v919_v7 = vld [vmem:[%s1245_s3 + $0x38] sm:$0xff]   ;;  %v920_v8 = vld [vmem:[%s1245_s3 + $0x70] sm:$0xff]   ;;  %s702_s30 = sshll.u32 %s956_s29, 4  ;;  %s703_s30 = int_to_ptr.vmem [resolvable:$true] %s702_s30 }
  0x3c   :  { %504 = vmatpush2.bf16.msra.mxu1 %v907_v63  ;;  %464 = vmatprep.subr.bf16.mxu0 %v908_v0  ;;  %v921_v9 = vld [vmem:[%s1245_s3 + $0x30] sm:$0xff]   ;;  %v922_v10 = vld [vmem:[%s1245_s3 + $0x68] sm:$0xff]   ;;  %v924_v12 = vld [vmem:[%s1245_s3 + $0x60] sm:$0xff]   ;;  %v91_v23 = vshrl.u32 %v90_v22, 7  ;;  %s934_s6 = scalar_lea.vmem %s703_s30, 128  ;;  %p939_p1 = scmp.lt.s32.totalorder %s703_s30, %s703_s30 }
  0x3d   :  { %505 = vmatprep.subr.bf16.mxu1 %v910_v1  ;;  %v923_v11 = vld [vmem:[%s1245_s3 + $0x28] sm:$0xff]   ;;  %v925_v13 = vld [vmem:[%s1245_s3 + $0x20] sm:$0xff]   ;;  %v926_v14 = vld [vmem:[%s1245_s3 + $0x58] sm:$0xff]   ;;  %p935_p0 = scmp.ne.s32.totalorder %s703_s30, %s934_s6  ;;  %p940_p2 = scmp.lt.s32.totalorder %s934_s6, %s934_s6 }
  0x3e   :  { %v927_v15 = vld [vmem:[%s1245_s3 + $0x18] sm:$0xff]   ;;  %v928_v16 = vld [vmem:[%s1245_s3 + $0x50] sm:$0xff]   ;;  %v930_v18 = vld [vmem:[%s1245_s3 + $0x48] sm:$0xff]   ;;  %v92_v24 = vsub.s32 0, %v91_v23  ;;  %v96_v26 = vsub.s32 1, %v91_v23 }
  0x3f   :  { %465 = vmatpush2.bf16.msra.mxu0 %v912_v2  ;;  %v929_v17 = vld [vmem:[%s1245_s3 + $0x10] sm:$0xff]   ;;  %v931_v19 = vld [vmem:[%s1245_s3 + $0x8] sm:$0xff]   ;;  %v932_v20 = vld [vmem:[%s1245_s3 + $0x40] sm:$0xff]   ;;  %p941_p3 = por %p940_p2, %p939_p1 }
  0x40   :  { %506 = vmatpush2.bf16.msra.mxu1 %v913_v3  ;;  %795 = vmatprep.subr.bf16.mxu0 %v918_v4  ;;  %v933_v21 = vld [vmem:[%s1245_s3] sm:$0xff]  }
  0x41   :  { %v88_v25 = vld [vmem:[%s1244_s2] sm:$0x3]  ;;  %p942_p4 = pnand %p941_p3, %p935_p0 }
  0x42   :  { %467 = vmatmul.mubr.bf16.vlgmr.msra.gmra.mxu0 %v710_v5  ;;  %v93_v27 = vrot.slane %v88_v25, %v92_v24  ;;  %v97_v28 = vrot.slane %v88_v25, %v96_v26  ;;  %v778_v47 = vld [vmem:[%s1246_s4] ss:$0 sm:$0xff] }
  0x43   :  { %508 = vmatmul.mubr.bf16.vlgmr.msra.gmra.mxu1 %v712_v6  ;;  %796 = vmatpush3.bf16.msra.mxu0 %v919_v7 }
  0x44   :  { %797 = vmatprep.subr.bf16.mxu0 %v920_v8 }
  0x47   :  { %798 = vmatpush3.bf16.msra.mxu0 %v921_v9 }
  0x48   :  { %799 = vmatprep.subr.bf16.mxu0 %v922_v10 }
  0x4b   :  { %800 = vmatpush3.bf16.msra.mxu0 %v923_v11 }
  0x4c   :  { %801 = vmatprep.subr.bf16.mxu0 %v924_v12 }
  0x4f   :  { %802 = vmatpush3.bf16.msra.mxu0 %v925_v13 }
  0x50   :  { %803 = vmatprep.subr.bf16.mxu0 %v926_v14 }
  0x53   :  { %804 = vmatpush3.bf16.msra.mxu0 %v927_v15 }
  0x54   :  { %805 = vmatprep.subr.bf16.mxu0 %v928_v16 }
  0x57   :  { %806 = vmatpush3.bf16.msra.mxu0 %v929_v17 }
  0x58   :  { %807 = vmatprep.subr.bf16.mxu0 %v930_v18 }
  0x5b   :  { %808 = vmatpush3.bf16.msra.mxu0 %v931_v19 }
  0x5c   :  { %809 = vmatprep.subr.bf16.mxu0 %v932_v20 }
  0x5f   :  { %810 = vmatpush3.bf16.msra.mxu0 %v933_v21 }
 0x102   :  { %v468_v29 = vpop.f32.mrf.mxu0 }
 0x103   :  { %v509_v30 = vpop.f32.mrf.mxu1  ;;  %v469_v31 = vadd.f32 %v468_v29, %v93_v27 }
 0x104   :  { %v470_v32 = vpop.f32.mrf.mxu0 }
 0x105   :  { %v511_v33 = vpop.f32.mrf.mxu1  ;;  %v510_v34 = vadd.f32 %v509_v30, %v469_v31  ;;  %v471_v35 = vadd.f32 %v470_v32, %v97_v28 }
 0x106   :  { %v472_v36 = vpop.f32.mrf.mxu0 }
 0x107   :  { %v513_v37 = vpop.f32.mrf.mxu1  ;;  %v512_v38 = vadd.f32 %v511_v33, %v471_v35  ;;  %v516_v39 = vmax.f32 %v510_v34, 0.0 }
 0x108   :  { %v473_v40 = vpop.f32.mrf.mxu0 }
 0x109   :  { %v514_v41 = vpop.f32.mrf.mxu1  ;;  %v517_v42 = vmax.f32 %v512_v38, 0.0  ;;  %v518_v44 = vpack.c.bf16 %v516_v39, %v516_v39 }
 0x10b   :  { %v519_v43 = vpack.c.bf16 %v517_v42, %v517_v42 }
 0x10d   :  { %687 = vmatprep.mubr.bf16.mxu0 %v519_v43 }
 0x10e   :  { %688 = vmatmul.mubr.bf16.vlgmr.msra.gmra.mxu0 %v518_v44 }
 0x1ce   :  { %v811_v45 = vpop.f32.mrf.mxu0 }
 0x1d0   :  { %v812_v46 = vpop.f32.mrf.mxu0 }
 0x1d1   :  { %v813_v48 = vadd.f32 %v812_v46, %v811_v45 }
 0x1d2   :  { %v814_v49 = vpop.f32.mrf.mxu0 }
 0x1d3   :  { %v690_v50 = vadd.f32 %v813_v48, %v778_v47 }
 0x1d4   :  { %v815_v51 = vpop.f32.mrf.mxu0 }
 0x1d5   :  { %695 = vst [vmem:[#allocation2] sm:$0xff] %v690_v50 }
 0x1d6   :  { %945 = shalt.err (!%p942_p4)
}
 0x1d7   :  { %705 = dma.vmem_to_hbm [thread:$0]  %s703_s30, 128, %s1247_s5, [#allocation3]  }
 0x1d8   :  { %954 = dma.done.wait [#allocation3], 128  }
 0x1d9   :  { %955 = vsyncadd [#allocation3], 4294967168 }
 0x1da   :  { %709 = vsyncpa [#allocation3], 1 }

</bundles_post_ra>
